<compile_context>
chip_gen: v6e
topology: v6e:2x2x1
jax: 0.10.0
libtpu: 0.0.40
codegen_flags: <defaults>
</compile_context>

<pallas_src>
import functools

import jax
import jax.numpy as jnp
from jax import lax
from jax.experimental import pallas as pl
from jax.experimental.pallas import tpu as pltpu


def _gather_tokens_kernel(idx_ref, x_ref, o_ref, *, n_tokens, precision):
    # idx_ref: (b_tile, n_out, 1) int32   — kept-token indices for these batch rows
    # x_ref:   (b_tile, N, d_tile)        — token slab for the current D tile
    # o_ref:   (b_tile, n_out, d_tile)    — gathered output tile
    b_tile, n_out, _ = idx_ref.shape

    # onehot[b, k, t] = (t == idx[b, k]); built in native (M=n_out, K=N) orientation so
    # the dot_general below needs no LHS transpose.  Rebuilt every step (cheap VPU work
    # hidden under the HBM-bound DMA) so both grid axes stay "parallel".
    tok = lax.broadcasted_iota(jnp.int32, (b_tile, n_out, n_tokens), 2)
    onehot = (tok == idx_ref[...]).astype(x_ref.dtype)

    # Gather = MXU matmul: out[b, k, d] = sum_t onehot[b, k, t] * x[b, t, d] = x[b, idx[b,k], d].
    # Exact 0/1 weights + f32 accumulation keep the gather numerically exact.
    gathered = lax.dot_general(
        onehot, x_ref[...],
        dimension_numbers=(((2,), (1,)), ((0,), (0,))),   # 'bkn,bnd->bkd'
        preferred_element_type=jnp.float32,
        precision=precision)
    o_ref[...] = gathered.astype(o_ref.dtype)


def _vmem_caps():
    """(per-row slab budget, vmem_limit_bytes) tuned per TPU generation."""
    cap = 64 << 20  # conservative default (v7x-class) if the query fails
    try:
        cap = int(pltpu.get_tpu_info().vmem_capacity_bytes)
    except Exception:
        pass
    if cap > (64 << 20):          # v5e / v6e class: 128 MiB physical VMEM
        return 12 << 20, 64 << 20
    return 6 << 20, 32 << 20      # v7x class: 64 MiB physical per TensorCore


def _pick_tiles(B, N, n_out, D, itemsize, slab_budget, vmem_limit):
    """Pick (b_tile, d_tile): lane-dense D tiles + batch-row batching under VMEM budget."""
    if D % 128 == 0:
        d_tile = 128
        for cand in range(128, D + 1, 128):
            if D % cand == 0 and N * cand * itemsize <= slab_budget:
                d_tile = cand
    else:
        d_tile = D  # BlockSpec then requires the full dimension

    # Per-batch-row resident footprint: double-buffered in/out slabs + one-hot temp + idx tile.
    row_bytes = (2 * N * d_tile + 2 * n_out * d_tile + n_out * N) * itemsize + n_out * 512
    b_tile = 1
    for cand in range(2, min(B, 8) + 1):
        if B % cand == 0 and cand * row_bytes <= vmem_limit - (2 << 20):
            b_tile = cand
    return b_tile, d_tile


def patch_dropout(x, prob, key, *, training=True, exclude_first_token=True):
    """Pallas implementation of PatchDropout.forward."""
    assert 0.0 <= prob < 1.0
    if (not training) or prob == 0.0:
        return x

    # TODO(synk): integer / f16 / f8 inputs take the exact pure-JAX gather (the f32
    # one-hot matmul path would silently round int values > 2^24).
    if jnp.dtype(x.dtype) not in (jnp.dtype(jnp.float32), jnp.dtype(jnp.bfloat16)):
        return patch_dropout_ref(x, prob, key, training=training,
                                 exclude_first_token=exclude_first_token)

    B, N, D = x.shape
    num_tokens = N - 1 if exclude_first_token else N

    keep_prob = 1.0 - prob
    num_keep = max(1, int(num_tokens * keep_prob))

    # torch.randn(batch, num_tokens).topk(num_keep, dim=-1).indices
    # TODO(synk): torch.randn and jax.random.normal cannot match bit-for-bit; semantics
    # (iid normal scores -> top-k kept patches, unsorted index order) are identical.
    rand = jax.random.normal(key, (B, num_tokens), dtype=jnp.float32)
    _, patch_indices_keep = jax.lax.top_k(rand, num_keep)   # (B, num_keep)
    patch_indices_keep = patch_indices_keep.astype(jnp.int32)

    if exclude_first_token:
        # Token 0 is the CLS token; patch indices shift by +1 and CLS is re-prepended by
        # folding index 0 into the gather list.
        cls_idx = jnp.zeros((B, 1), dtype=jnp.int32)
        gather_idx = jnp.concatenate([cls_idx, patch_indices_keep + 1], axis=1)
        n_out = num_keep + 1
    else:
        gather_idx = patch_indices_keep
        n_out = num_keep

    gather_idx = gather_idx.reshape(B, n_out, 1)             # sublane-oriented for the iota compare

    slab_budget, vmem_limit = _vmem_caps()
    b_tile, d_tile = _pick_tiles(B, N, n_out, D, x.dtype.itemsize, slab_budget, vmem_limit)
    n_b = B // b_tile
    n_d = D // d_tile

    # bf16: 0/1 weights make single-pass MXU already exact; f32: HIGHEST for exact
    # 3-chunk reconstruction.  (On v5e the f32/HIGHEST path is MXU-heavier; acceptable
    # since the gather must stay exact.)
    precision = (lax.Precision.HIGHEST if jnp.dtype(x.dtype) == jnp.dtype(jnp.float32)
                 else lax.Precision.DEFAULT)

    kernel = functools.partial(_gather_tokens_kernel, n_tokens=N, precision=precision)

    out = pl.pallas_call(
        kernel,
        out_shape=jax.ShapeDtypeStruct((B, n_out, D), x.dtype),
        grid_spec=pltpu.PrefetchScalarGridSpec(
            num_scalar_prefetch=0,
            grid=(n_b, n_d),
            in_specs=[
                pl.BlockSpec((b_tile, n_out, 1), lambda b, d: (b, 0, 0)),   # gather indices
                pl.BlockSpec((b_tile, N, d_tile), lambda b, d: (b, 0, d)),  # token slab (D tile)
            ],
            out_specs=pl.BlockSpec((b_tile, n_out, d_tile), lambda b, d: (b, 0, d)),
        ),
        compiler_params=pltpu.CompilerParams(
            dimension_semantics=("parallel", "parallel"),
            vmem_limit_bytes=vmem_limit),
    )(gather_idx, x)
    return out


def patch_dropout_ref(x, prob, key, *, training=True, exclude_first_token=True):
    """Pure-JAX reference reproducing the PyTorch forward semantics."""
    if (not training) or prob == 0.0:
        return x
    if exclude_first_token:
        cls_tokens, body = x[:, :1], x[:, 1:]
    else:
        cls_tokens, body = x[:, :1], x
    B, num_tokens, _ = body.shape
    keep_prob = 1.0 - prob
    num_keep = max(1, int(num_tokens * keep_prob))
    rand = jax.random.normal(key, (B, num_tokens), dtype=jnp.float32)
    _, keep_idx = jax.lax.top_k(rand, num_keep)
    gathered = jnp.take_along_axis(body, keep_idx[:, :, None], axis=1)
    if exclude_first_token:
        gathered = jnp.concatenate([cls_tokens, gathered], axis=1)
    return gathered


if __name__ == "__main__":
    key = jax.random.PRNGKey(0)
    kx, kdrop = jax.random.split(key)

    # Small shapes: batch=2, tokens=1 CLS + 16 patches = 17, hidden=128.
    B, N, D = 2, 17, 128
    prob = 0.5
    x = jax.random.normal(kx, (B, N, D), dtype=jnp.float32)

    # exclude_first_token=True path (f32, HIGHEST precision gather)
    out = patch_dropout(x, prob, kdrop, training=True, exclude_first_token=True)
    out = jax.block_until_ready(out)
    ref = patch_dropout_ref(x, prob, kdrop, training=True, exclude_first_token=True)
    assert out.shape == ref.shape, (out.shape, ref.shape)
    assert jnp.allclose(out, ref), "mismatch vs reference (exclude_first_token=True)"

    # exclude_first_token=False path
    out2 = patch_dropout(x, prob, kdrop, training=True, exclude_first_token=False)
    out2 = jax.block_until_ready(out2)
    ref2 = patch_dropout_ref(x, prob, kdrop, training=True, exclude_first_token=False)
    assert out2.shape == ref2.shape, (out2.shape, ref2.shape)
    assert jnp.allclose(out2, ref2), "mismatch vs reference (exclude_first_token=False)"

    # bf16 path (DEFAULT precision, still exact under 0/1 weights)
    xb = x.astype(jnp.bfloat16)
    out3 = patch_dropout(xb, prob, kdrop, training=True, exclude_first_token=True)
    out3 = jax.block_until_ready(out3)
    ref3 = patch_dropout_ref(xb, prob, kdrop, training=True, exclude_first_token=True)
    assert out3.shape == ref3.shape, (out3.shape, ref3.shape)
    assert jnp.allclose(out3.astype(jnp.float32), ref3.astype(jnp.float32)), \
        "mismatch vs reference (bf16)"

    # Eval mode / prob==0 pass-through sanity check (no kernel needed).
    same = patch_dropout(x, prob, kdrop, training=False)
    assert jnp.allclose(same, x)

    print("KERNEL_OK")
</pallas_src>

<mosaic_0001>
module attributes {stable_mosaic.version = 11 : i64} {
  func.func @_gather_tokens_kernel(%arg0: i32, %arg1: i32, %arg2: memref<2x9x1xi32, #tpu.memory_space<vmem>>, %arg3: memref<2x17x128xf32, #tpu.memory_space<vmem>>, %arg4: memref<2x9x128xf32, #tpu.memory_space<vmem>>) attributes {dimension_semantics = [#tpu.dimension_semantics<parallel>, #tpu.dimension_semantics<parallel>], iteration_bounds = array<i64: 1, 1>, scalar_prefetch = 0 : i64, scratch_operands = 0 : i64, tpu.core_type = #tpu.core_type<tc>, window_params = [{transform_indices = @transform_0, window_bounds = array<i64: 2, 9, 1>}, {transform_indices = @transform_1, window_bounds = array<i64: 2, 17, 128>}, {transform_indices = @transform_2, window_bounds = array<i64: 2, 9, 128>}]} {
    %0 = tpu.iota {dimensions = array<i32: 2>} : vector<2x9x17xi32>
    %c0 = arith.constant 0 : index
    %c0_0 = arith.constant 0 : index
    %c0_1 = arith.constant 0 : index
    %1 = vector.load %arg2[%c0, %c0_0, %c0_1] : memref<2x9x1xi32, #tpu.memory_space<vmem>>, vector<2x9x1xi32>
    %2 = vector.broadcast %1 : vector<2x9x1xi32> to vector<2x9x17xi32>
    %3 = arith.cmpi eq, %0, %2 : vector<2x9x17xi32>
    %4 = arith.extui %3 : vector<2x9x17xi1> to vector<2x9x17xi32>
    %5 = arith.sitofp %4 : vector<2x9x17xi32> to vector<2x9x17xf32>
    %c0_2 = arith.constant 0 : index
    %c0_3 = arith.constant 0 : index
    %c0_4 = arith.constant 0 : index
    %6 = vector.load %arg3[%c0_2, %c0_3, %c0_4] : memref<2x17x128xf32, #tpu.memory_space<vmem>>, vector<2x17x128xf32>
    %cst = arith.constant dense<0.000000e+00> : vector<2x9x128xf32>
    %7 = tpu.matmul %5, %6, %cst {dimension_numbers = #tpu.dot_dimension_numbers<[2], [1], [1], [2], [0, 0, 0, 1, 1, 2], [0], [0]>, precision = #tpu.contract_precision<fp32>} : vector<2x9x17xf32>, vector<2x17x128xf32>, vector<2x9x128xf32> -> vector<2x9x128xf32>
    %c0_5 = arith.constant 0 : index
    %c0_6 = arith.constant 0 : index
    %c0_7 = arith.constant 0 : index
    %8 = vector.load %arg4[%c0_5, %c0_6, %c0_7] : memref<2x9x128xf32, #tpu.memory_space<vmem>>, vector<2x9x128xf32>
    tpu.vector_store %arg4[%c0_5, %c0_6, %c0_7], %7 {strides = array<i32>} : memref<2x9x128xf32, #tpu.memory_space<vmem>>, vector<2x9x128xf32>,
    return
  }
  func.func @transform_0(%arg0: i32, %arg1: i32) -> (i32, i32, i32) {
    %c0_i32 = arith.constant 0 : i32
    %c0_i32_0 = arith.constant 0 : i32
    %c0_i32_1 = arith.constant 0 : i32
    return %arg0, %c0_i32, %c0_i32_0 : i32, i32, i32
  }
  func.func @transform_1(%arg0: i32, %arg1: i32) -> (i32, i32, i32) {
    %c0_i32 = arith.constant 0 : i32
    %c0_i32_0 = arith.constant 0 : i32
    return %arg0, %c0_i32, %arg1 : i32, i32, i32
  }
  func.func @transform_2(%arg0: i32, %arg1: i32) -> (i32, i32, i32) {
    %c0_i32 = arith.constant 0 : i32
    %c0_i32_0 = arith.constant 0 : i32
    return %arg0, %c0_i32, %arg1 : i32, i32, i32
  }
}

</mosaic_0001>

<bundles_post_ra>
// kernel: tpu_custom_call.1
= control target key start
LH: loop header
LB: loop body
LE: loop exit
PB: predicated region body
PF: predicated region fallthrough
CT: control target
= control target key end

     0   :  { %vm54_vm0 = vcmask 1040384   ;;  %v1293_v0 = vmov 0   ;;  %v11_v26 = vlaneseq  ;;  %vm47_vm1 = vcmask 138240   ;;  %s1518_s0 = inlined_call_operand.vmem [shape: s32[2,9,1], index: 0, kind: input, shape index: {}]   ;;  %s1519_s1 = inlined_call_operand.vmem [shape: f32[2,17,128], index: 1, kind: input, shape index: {}]   ;;  %s1520_s2 = inlined_call_operand.vmem [shape: f32[2,9,128], index: 2, kind: output, shape index: {}]  }
   0x1   :  { %1291 = vset.pattern.permute.xlu0 %v1293_v0  ;;  %v13_v1 = vld [vmem:[%s1518_s0] sm:$0xff]  ;;  %1292 = vset.pattern.permute.xlu1 %v1293_v0  ;;  %v15_v2 = vld [vmem:[%s1518_s0 + $0x10] sm:$0xff]  ;;  %v14_v3 = vld [vmem:[%s1518_s0 + $0x8] sm:$0x1]  ;;  %v1294_v31 = vmov 0.0  }
   0x2   :  { %18 = vperm.xlu0 %1291, %v13_v1   ;;  %24 = vperm.xlu1 %1292, %v15_v2   ;;  %v43_v4 = vld [vmem:[%s1519_s1 + $0x10] sm:$0x1]  ;;  %v46_v5 = vld [vmem:[%s1519_s1 + $0x28] sm:$0x1]  ;;  %v16_v6 = vld [vmem:[%s1518_s0 + $0x18] sm:$0x1] }
   0x3   :  { %v56_v7 = vsel %vm54_vm0, %v43_v4, 0  ;;  %v580_v8 = vsel %vm54_vm0, %v46_v5, 0  ;;  %v42_v9 = vld [vmem:[%s1519_s1 + $0x8] sm:$0xff]  ;;  %v41_v10 = vld [vmem:[%s1519_s1] sm:$0xff]  ;;  %v1372_v27 = vand.u32 127, %v11_v26  ;;  %v44_v35 = vld [vmem:[%s1519_s1 + $0x18] sm:$0xff] }
   0x4   :  { %v1334_v11 = vand.u32 4294901760, %v56_v7  ;;  %v1336_v12 = vand.u32 4294901760, %v42_v9  ;;  %v1338_v13 = vand.u32 4294901760, %v41_v10  ;;  %v45_v28 = vld [vmem:[%s1519_s1 + $0x20] sm:$0xff]  ;;  %v1377_v29 = vand.u32 4294901760, %v580_v8 }
   0x5   :  { %v1382_v33 = vand.u32 4294901760, %v45_v28  ;;  %v1400_v42 = vand.u32 4294901760, %v44_v35 }
   0x6   :  { %21 = vperm.xlu0 %1291, %v14_v3   ;;  %27 = vperm.xlu1 %1292, %v16_v6   ;;  %v1341_v14 = vsub.f32 %v56_v7, %v1334_v11  ;;  %v1344_v15 = vsub.f32 %v42_v9, %v1336_v12  ;;  %v1347_v16 = vsub.f32 %v41_v10, %v1338_v13 }
   0x7   :  { %1181 = vmatprep.subr.mxu0 %v1334_v11  ;;  %v1392_v38 = vsub.f32 %v580_v8, %v1377_v29  ;;  %v1398_v41 = vsub.f32 %v45_v28, %v1382_v33  ;;  %v1417_v51 = vsub.f32 %v44_v35, %v1400_v42 }
   0x8   :  { %v1351_v17 = vand.u32 4294901760, %v1341_v14  ;;  %v1354_v18 = vand.u32 4294901760, %v1344_v15  ;;  %v1357_v19 = vand.u32 4294901760, %v1347_v16  ;;  %1182 = vmatpush3.msra.mxu0 %v1334_v11 }
   0x9   :  { %1183 = vmatprep.subr.mxu0 %v1336_v12  ;;  %v1409_v47 = vand.u32 4294901760, %v1392_v38  ;;  %v1414_v50 = vand.u32 4294901760, %v1398_v41  ;;  %v1434_v59 = vand.u32 4294901760, %v1417_v51 }
   0xa   :  { %v176_v20 = vsub.f32 %v1341_v14, %v1351_v17  ;;  %v183_v21 = vsub.f32 %v1344_v15, %v1354_v18  ;;  %v190_v22 = vsub.f32 %v1347_v16, %v1357_v19  ;;  %1184 = vmatpush3.msra.mxu0 %v1336_v12 }
   0xb   :  { %1185 = vmatprep.subr.mxu0 %v1338_v13  ;;  %v700_v54 = vsub.f32 %v1392_v38, %v1409_v47  ;;  %v707_v58 = vsub.f32 %v1398_v41, %v1414_v50  ;;  %v714_v63 = vsub.f32 %v1417_v51, %v1434_v59 }
   0xc   :  { %v177_v23 = vand.u32 4294901760, %v176_v20  ;;  %v184_v24 = vand.u32 4294901760, %v183_v21  ;;  %1186 = vmatpush3.msra.mxu0 %v1338_v13  ;;  %v191_v25 = vand.u32 4294901760, %v190_v22 }
   0xd   :  { %1199 = vmatprep.subr.mxu0 %v1341_v14  ;;  %v701_v60 = vand.u32 4294901760, %v700_v54  ;;  %v708_v62 = vand.u32 4294901760, %v707_v58  ;;  %v715_v3 = vand.u32 4294901760, %v714_v63 }
   0xe   :  { %1190 = vmatprep.subr.mxu1 %v177_v23 }
   0xf   :  { %1191 = vmatpush3.msra.mxu1 %v177_v23 }
  0x10   :  { %1192 = vmatprep.subr.mxu1 %v184_v24 }
  0x11   :  { %1193 = vmatpush3.msra.mxu1 %v184_v24 }
  0x12   :  { %1194 = vmatprep.subr.mxu1 %v191_v25 }
  0x13   :  { %1195 = vmatpush3.msra.mxu1 %v191_v25 }
  0x14   :  { %1208 = vmatprep.subr.mxu1 %v1334_v11 }
  0x7d   :  { %v19_v30 = vpop.permute.xlu0 %18  ;;  %v25_v44 = vpop.permute.xlu1 %24 }
  0x7e   :  { %vm29_vm2 = vcmp.eq.s32.totalorder %v1372_v27, %v19_v30  ;;  %vm31_vm4 = vcmp.eq.s32.totalorder %v1372_v27, %v25_v44 }
  0x7f   :  { %v1380_v32 = vsel %vm29_vm2, 1.0, %v1294_v31  ;;  %v1420_v52 = vsel %vm31_vm4, 1.0, %v1294_v31 }
  0x80   :  { %v49_v34 = vsel %vm47_vm1, %v1380_v32, 0  ;;  %1196 = vmatprep.mubr.msk.f32.mxu1 %vm47_vm1, %v1380_v32  ;;  %v574_v56 = vsel %vm47_vm1, %v1420_v52, 0 }
  0x81   :  { %v127_v36 = vsub.f32 %v49_v34, %v49_v34  ;;  %v22_v37 = vpop.permute.xlu0 %21  ;;  %v28_v55 = vpop.permute.xlu1 %27  ;;  %v651_v61 = vsub.f32 %v574_v56, %v574_v56 }
  0x82   :  { %vm30_vm3 = vcmp.eq.s32.totalorder %v1372_v27, %v22_v37  ;;  %vm32_vm5 = vcmp.eq.s32.totalorder %v1372_v27, %v28_v55 }
  0x83   :  { %v1395_v39 = vsel %vm30_vm3, 1.0, %v1294_v31  ;;  %v128_v40 = vand.u32 4294901760, %v127_v36  ;;  %v1444_v0 = vsel %vm32_vm5, 1.0, %v1294_v31  ;;  %v652_v1 = vand.u32 4294901760, %v651_v61 }
  0x84   :  { %v52_v43 = vsel %vm47_vm1, %v1395_v39, 0  ;;  %1197 = vmatmul.mubr.msk.f32.vlgmr.msra.gmra.mxu1 %vm47_vm1, %v1395_v39  ;;  %v577_v2 = vsel %vm47_vm1, %v1444_v0, 0 }
  0x85   :  { %v137_v45 = vsub.f32 %v52_v43, %v52_v43  ;;  %1209 = vmatpush3.msra.mxu1 %v1334_v11  ;;  %1214 = vmatprep.mubr.f32.mxu1 %v128_v40  ;;  %v129_v46 = vsub.f32 %v127_v36, %v128_v40  ;;  %v661_v4 = vsub.f32 %v577_v2, %v577_v2 }
  0x86   :  { %1210 = vmatprep.subr.mxu1 %v1336_v12  ;;  %v653_v5 = vsub.f32 %v651_v61, %v652_v1 }
  0x87   :  { %1211 = vmatpush3.msra.mxu1 %v1336_v12  ;;  %v130_v48 = vand.u32 4294901760, %v129_v46  ;;  %v138_v49 = vand.u32 4294901760, %v137_v45  ;;  %v662_v7 = vand.u32 4294901760, %v661_v4 }
  0x88   :  { %1212 = vmatprep.subr.mxu1 %v1338_v13  ;;  %v654_v6 = vand.u32 4294901760, %v653_v5 }
  0x89   :  { %1213 = vmatpush3.msra.mxu1 %v1338_v13  ;;  %1187 = vmatprep.mubr.f32.mxu0 %v130_v48  ;;  %v139_v53 = vsub.f32 %v137_v45, %v138_v49  ;;  %v663_v8 = vsub.f32 %v661_v4, %v662_v7 }
  0x8a   :  { %1215 = vmatmul.mubr.f32.vlgmr.msra.gmra.mxu1 %v138_v49  ;;  %1226 = vmatprep.subr.mxu1 %v1334_v11 }
  0x8b   :  { %1227 = vmatpush3.msra.mxu1 %v1334_v11  ;;  %1232 = vmatprep.mubr.msk.f32.mxu1 %vm47_vm1, %v1380_v32  ;;  %v140_v57 = vand.u32 4294901760, %v139_v53  ;;  %v664_v9 = vand.u32 4294901760, %v663_v8 }
  0x8c   :  { %1228 = vmatprep.subr.mxu1 %v1336_v12 }
  0x8d   :  { %1229 = vmatpush3.msra.mxu1 %v1336_v12  ;;  %1188 = vmatmul.mubr.f32.vlgmr.msra.gmra.mxu0 %v140_v57 }
  0x8e   :  { %1200 = vmatpush3.msra.mxu0 %v1341_v14  ;;  %1230 = vmatprep.subr.mxu1 %v1338_v13 }
  0x8f   :  { %1201 = vmatprep.subr.mxu0 %v1344_v15  ;;  %1205 = vmatprep.mubr.f32.mxu0 %v127_v36 }
  0x90   :  { %1231 = vmatpush3.msra.mxu1 %v1338_v13  ;;  %1202 = vmatpush3.msra.mxu0 %v1344_v15 }
  0x91   :  { %1233 = vmatmul.mubr.msk.f32.vlgmr.msra.gmra.mxu1 %vm47_vm1, %v1395_v39  ;;  %1244 = vmatprep.subr.mxu1 %v701_v60 }
  0x92   :  { %1203 = vmatprep.subr.mxu0 %v1347_v16  ;;  %1245 = vmatpush3.msra.mxu1 %v701_v60 }
  0x93   :  { %1204 = vmatpush3.msra.mxu0 %v1347_v16  ;;  %1246 = vmatprep.subr.mxu1 %v708_v62 }
  0x94   :  { %1206 = vmatmul.mubr.f32.vlgmr.msra.gmra.mxu0 %v137_v45  ;;  %1217 = vmatprep.subr.mxu0 %v1351_v17 }
  0x95   :  { %1247 = vmatpush3.msra.mxu1 %v708_v62  ;;  %1250 = vmatprep.mubr.msk.f32.mxu1 %vm47_vm1, %v1420_v52 }
  0x96   :  { %1218 = vmatpush3.msra.mxu0 %v1351_v17  ;;  %1223 = vmatprep.mubr.msk.f32.mxu0 %vm47_vm1, %v1380_v32 }
  0x97   :  { %1248 = vmatprep.subr.mxu1 %v715_v3  ;;  %1219 = vmatprep.subr.mxu0 %v1354_v18 }
  0x98   :  { %1249 = vmatpush3.msra.mxu1 %v715_v3  ;;  %1220 = vmatpush3.msra.mxu0 %v1354_v18 }
  0x99   :  { %1251 = vmatmul.mubr.msk.f32.vlgmr.msra.gmra.mxu1 %vm47_vm1, %v1444_v0  ;;  %1262 = vmatprep.subr.mxu1 %v1377_v29 }
  0x9a   :  { %1221 = vmatprep.subr.mxu0 %v1357_v19  ;;  %1263 = vmatpush3.msra.mxu1 %v1377_v29 }
  0x9b   :  { %1222 = vmatpush3.msra.mxu0 %v1357_v19  ;;  %1264 = vmatprep.subr.mxu1 %v1382_v33 }
  0x9c   :  { %1268 = vmatprep.mubr.f32.mxu1 %v652_v1  ;;  %1224 = vmatmul.mubr.msk.f32.vlgmr.msra.gmra.mxu0 %vm47_vm1, %v1395_v39 }
  0x9d   :  { %1235 = vmatprep.subr.mxu0 %v1377_v29  ;;  %1265 = vmatpush3.msra.mxu1 %v1382_v33 }
  0x9e   :  { %1236 = vmatpush3.msra.mxu0 %v1377_v29  ;;  %1241 = vmatprep.mubr.f32.mxu0 %v654_v6 }
  0x9f   :  { %1266 = vmatprep.subr.mxu1 %v1400_v42  ;;  %1237 = vmatprep.subr.mxu0 %v1382_v33 }
  0xa0   :  { %1267 = vmatpush3.msra.mxu1 %v1400_v42  ;;  %1238 = vmatpush3.msra.mxu0 %v1382_v33 }
  0xa1   :  { %1269 = vmatmul.mubr.f32.vlgmr.msra.gmra.mxu1 %v662_v7  ;;  %1280 = vmatprep.subr.mxu1 %v1377_v29 }
  0xa2   :  { %1239 = vmatprep.subr.mxu0 %v1400_v42  ;;  %1281 = vmatpush3.msra.mxu1 %v1377_v29 }
  0xa3   :  { %1286 = vmatprep.mubr.msk.f32.mxu1 %vm47_vm1, %v1420_v52  ;;  %1240 = vmatpush3.msra.mxu0 %v1400_v42 }
  0xa4   :  { %1282 = vmatprep.subr.mxu1 %v1382_v33  ;;  %1242 = vmatmul.mubr.f32.vlgmr.msra.gmra.mxu0 %v664_v9 }
  0xa5   :  { %1253 = vmatprep.subr.mxu0 %v1392_v38  ;;  %1283 = vmatpush3.msra.mxu1 %v1382_v33 }
  0xa6   :  { %1254 = vmatpush3.msra.mxu0 %v1392_v38  ;;  %1259 = vmatprep.mubr.f32.mxu0 %v651_v61 }
  0xa7   :  { %1284 = vmatprep.subr.mxu1 %v1400_v42  ;;  %1255 = vmatprep.subr.mxu0 %v1398_v41 }
  0xa8   :  { %1285 = vmatpush3.msra.mxu1 %v1400_v42  ;;  %1256 = vmatpush3.msra.mxu0 %v1398_v41 }
  0xa9   :  { %1287 = vmatmul.mubr.msk.f32.vlgmr.msra.gmra.mxu1 %vm47_vm1, %v1444_v0  ;;  %1257 = vmatprep.subr.mxu0 %v1417_v51 }
  0xaa   :  { %1258 = vmatpush3.msra.mxu0 %v1417_v51 }
  0xab   :  { %1260 = vmatmul.mubr.f32.vlgmr.msra.gmra.mxu0 %v661_v4  ;;  %1271 = vmatprep.subr.mxu0 %v1409_v47 }
  0xac   :  { %1272 = vmatpush3.msra.mxu0 %v1409_v47  ;;  %1277 = vmatprep.mubr.msk.f32.mxu0 %vm47_vm1, %v1420_v52 }
  0xad   :  { %1273 = vmatprep.subr.mxu0 %v1414_v50 }
  0xae   :  { %1274 = vmatpush3.msra.mxu0 %v1414_v50 }
  0xaf   :  { %1275 = vmatprep.subr.mxu0 %v1434_v59 }
  0xb0   :  { %1276 = vmatpush3.msra.mxu0 %v1434_v59 }
  0xb1   :  { %1278 = vmatmul.mubr.msk.f32.vlgmr.msra.gmra.mxu0 %vm47_vm1, %v1444_v0 }
 0x144   :  { %v1198_v11 = vpop.f32.mrf.mxu1 }
 0x146   :  { %v228_v13 = vpop.f32.mrf.mxu1 }
 0x14a   :  { %v1216_v16 = vpop.f32.mrf.mxu1 }
 0x14c   :  { %v395_v21 = vpop.f32.mrf.mxu1 }
 0x14d   :  { %v1189_v10 = vpop.f32.mrf.mxu0 }
 0x14e   :  { %v235_v15 = vadd.f32 %v1198_v11, %v1189_v10 }
 0x14f   :  { %v132_v12 = vpop.f32.mrf.mxu0 }
 0x150   :  { %v229_v18 = vadd.f32 %v228_v13, %v132_v12 }
 0x151   :  { %v1234_v23 = vpop.f32.mrf.mxu1 }
 0x153   :  { %v563_v30 = vpop.f32.mrf.mxu1 }
 0x154   :  { %v1207_v14 = vpop.f32.mrf.mxu0 }
 0x155   :  { %v320_v19 = vadd.f32 %v1207_v14, %v235_v15 }
 0x156   :  { %v312_v17 = vpop.f32.mrf.mxu0 }
 0x157   :  { %v313_v20 = vadd.f32 %v312_v17, %v229_v18  ;;  %v404_v22 = vadd.f32 %v1216_v16, %v320_v19 }
 0x159   :  { %v396_v26 = vadd.f32 %v395_v21, %v313_v20  ;;  %v1252_v32 = vpop.f32.mrf.mxu1 }
 0x15b   :  { %v752_v34 = vpop.f32.mrf.mxu1 }
 0x15c   :  { %v1225_v24 = vpop.f32.mrf.mxu0 }
 0x15d   :  { %v490_v25 = vadd.f32 %v1225_v24, %v404_v22 }
 0x15e   :  { %v483_v27 = vpop.f32.mrf.mxu0 }
 0x15f   :  { %v570_v28 = vadd.f32 %v1234_v23, %v490_v25  ;;  %v484_v29 = vadd.f32 %v483_v27, %v396_v26 }
 0x161   :  { %1098 = vst [vmem:[%s1520_s2 + $0x8] sm:$0x1] %v570_v28  ;;  %v564_v31 = vadd.f32 %v563_v30, %v484_v29  ;;  %v1270_v37 = vpop.f32.mrf.mxu1 }
 0x163   :  { %1097 = vst [vmem:[%s1520_s2] sm:$0xff] %v564_v31  ;;  %v919_v43 = vpop.f32.mrf.mxu1 }
 0x164   :  { %v1243_v33 = vpop.f32.mrf.mxu0 }
 0x165   :  { %v759_v36 = vadd.f32 %v1252_v32, %v1243_v33 }
 0x166   :  { %v656_v35 = vpop.f32.mrf.mxu0 }
 0x167   :  { %v753_v39 = vadd.f32 %v752_v34, %v656_v35 }
 0x169   :  { %v1288_v45 = vpop.f32.mrf.mxu1 }
 0x16b   :  { %v1261_v38 = vpop.f32.mrf.mxu0  ;;  %v1087_v52 = vpop.f32.mrf.mxu1 }
 0x16c   :  { %v844_v40 = vadd.f32 %v1261_v38, %v759_v36 }
 0x16d   :  { %v836_v41 = vpop.f32.mrf.mxu0 }
 0x16e   :  { %v837_v42 = vadd.f32 %v836_v41, %v753_v39  ;;  %v928_v44 = vadd.f32 %v1270_v37, %v844_v40 }
 0x170   :  { %v920_v48 = vadd.f32 %v919_v43, %v837_v42 }
 0x171   :  { %v1279_v46 = vpop.f32.mrf.mxu0 }
 0x172   :  { %v1014_v47 = vadd.f32 %v1279_v46, %v928_v44 }
 0x173   :  { %v1007_v49 = vpop.f32.mrf.mxu0 }
 0x174   :  { %v1094_v50 = vadd.f32 %v1288_v45, %v1014_v47  ;;  %v1008_v51 = vadd.f32 %v1007_v49, %v920_v48 }
 0x176   :  { %1100 = vst [vmem:[%s1520_s2 + $0x18] sm:$0x1] %v1094_v50  ;;  %v1088_v53 = vadd.f32 %v1087_v52, %v1008_v51 }
 0x178   :  { %1099 = vst [vmem:[%s1520_s2 + $0x10] sm:$0xff] %v1088_v53 }

</bundles_post_ra>
